<compile_context>
chip_gen: v6e
topology: v6e:2x2x1
jax: 0.10.0
libtpu: 0.0.40
codegen_flags: <defaults>
</compile_context>

<pallas_src>
import functools

import jax
import jax.numpy as jnp
from jax.experimental import pallas as pl
from jax.experimental.pallas import tpu as pltpu


LANE = 512           # lane-dense last dim (multiple of 128)
MAX_TILE_ROWS = 256  # 256 x 512 f32 = 512 KiB per tile buffer


def _jitter_kernel(x_ref, z_ref, o_ref, *, sigma, clip):
    # noise = clamp(sigma * z, -clip, clip); out = x + noise
    z = z_ref[...].astype(jnp.float32)
    noise = jnp.clip(jnp.float32(sigma) * z,
                     jnp.float32(-clip), jnp.float32(clip))
    o_ref[...] = (x_ref[...].astype(jnp.float32) + noise).astype(o_ref.dtype)


def random_jitter(point_cloud, key, *, sigma=2.0, clip=2.0):
    """Pallas equivalent of RandomJitter.forward.

    point_cloud: (B, N, C) float array.
    key: jax PRNG key used to draw the Gaussian noise.
    """
    orig_shape = point_cloud.shape
    orig_dtype = point_cloud.dtype
    total = int(point_cloud.size)

    # ---- lane-dense layout: flatten and pad to (rows_padded, LANE) ----
    rows = pl.cdiv(total, LANE)
    if rows >= MAX_TILE_ROWS:
        tile_rows = MAX_TILE_ROWS                      # multiple of 8
        rows_padded = tile_rows * pl.cdiv(rows, tile_rows)
    else:
        tile_rows = rows                               # block == full dim
        rows_padded = rows
    padded_total = rows_padded * LANE

    flat = point_cloud.reshape(-1)
    if padded_total != total:
        flat = jnp.pad(flat, (0, padded_total - total))
    x2d = flat.reshape(rows_padded, LANE)

    # Standard-normal noise (same distribution as torch.randn_like).
    z2d = jax.random.normal(key, (rows_padded, LANE), dtype=jnp.float32)

    grid = (rows_padded // tile_rows,)
    block = pl.BlockSpec((tile_rows, LANE), lambda i: (i, 0))

    itemsize = jnp.dtype(orig_dtype).itemsize
    cost = pl.CostEstimate(
        flops=4 * padded_total,                       # mul + 2 cmp/sel + add
        transcendentals=0,
        bytes_accessed=padded_total * (2 * itemsize + 4),  # x in, out, z in
    )

    kernel = functools.partial(_jitter_kernel, sigma=float(sigma),
                               clip=float(clip))
    out2d = pl.pallas_call(
        kernel,
        out_shape=jax.ShapeDtypeStruct((rows_padded, LANE), orig_dtype),
        grid=grid,
        in_specs=[block, block],
        out_specs=block,
        compiler_params=pltpu.CompilerParams(
            dimension_semantics=("parallel",)),
        cost_estimate=cost,
    )(x2d, z2d)

    return out2d.reshape(-1)[:total].reshape(orig_shape)


if __name__ == "__main__":
    key = jax.random.PRNGKey(0)
    data_key, noise_key = jax.random.split(key)

    B, N, C = 2, 1024, 3  # small point cloud: 2 batches x 1024 points x xyz
    point_cloud = jax.random.normal(data_key, (B, N, C), dtype=jnp.float32)

    sigma, clip = 2.0, 2.0
    out = random_jitter(point_cloud, noise_key, sigma=sigma, clip=clip)
    out = jax.block_until_ready(out)

    # Sanity checks on the forward semantics: same shape/dtype, and the added
    # noise is bounded by the clip value and is not identically zero.
    assert out.shape == point_cloud.shape
    assert out.dtype == point_cloud.dtype
    noise = out - point_cloud
    assert bool(jnp.all(jnp.abs(noise) <= clip + 1e-5))
    assert bool(jnp.any(jnp.abs(noise) > 0.0))

    print("KERNEL_OK")
</pallas_src>

<mosaic_0001>
module attributes {stable_mosaic.version = 11 : i64} {
  func.func @_jitter_kernel(%arg0: i32, %arg1: memref<12x512xf32, #tpu.memory_space<vmem>>, %arg2: memref<12x512xf32, #tpu.memory_space<vmem>>, %arg3: memref<12x512xf32, #tpu.memory_space<vmem>>) attributes {dimension_semantics = [#tpu.dimension_semantics<parallel>], iteration_bounds = array<i64: 1>, scalar_prefetch = 0 : i64, scratch_operands = 0 : i64, tpu.core_type = #tpu.core_type<tc>, window_params = [{transform_indices = @transform_0, window_bounds = array<i64: 12, 512>}, {transform_indices = @transform_1, window_bounds = array<i64: 12, 512>}, {transform_indices = @transform_2, window_bounds = array<i64: 12, 512>}]} {
    %c0 = arith.constant 0 : index
    %c0_0 = arith.constant 0 : index
    %0 = vector.load %arg2[%c0, %c0_0] : memref<12x512xf32, #tpu.memory_space<vmem>>, vector<12x512xf32>
    %cst = arith.constant 2.000000e+00 : f32
    %1 = vector.broadcast %cst : f32 to vector<12x512xf32>
    %2 = arith.mulf %1, %0 : vector<12x512xf32>
    %cst_1 = arith.constant -2.000000e+00 : f32
    %cst_2 = arith.constant 2.000000e+00 : f32
    %3 = vector.broadcast %cst_1 : f32 to vector<12x512xf32>
    %4 = arith.maximumf %3, %2 : vector<12x512xf32>
    %5 = vector.broadcast %cst_2 : f32 to vector<12x512xf32>
    %6 = arith.minimumf %5, %4 : vector<12x512xf32>
    %c0_3 = arith.constant 0 : index
    %c0_4 = arith.constant 0 : index
    %7 = vector.load %arg1[%c0_3, %c0_4] : memref<12x512xf32, #tpu.memory_space<vmem>>, vector<12x512xf32>
    %8 = arith.addf %7, %6 : vector<12x512xf32>
    %c0_5 = arith.constant 0 : index
    %c0_6 = arith.constant 0 : index
    %9 = vector.load %arg3[%c0_5, %c0_6] : memref<12x512xf32, #tpu.memory_space<vmem>>, vector<12x512xf32>
    tpu.vector_store %arg3[%c0_5, %c0_6], %8 {strides = array<i32>} : memref<12x512xf32, #tpu.memory_space<vmem>>, vector<12x512xf32>,
    return
  }
  func.func @transform_0(%arg0: i32) -> (i32, i32) {
    %c0_i32 = arith.constant 0 : i32
    %c0_i32_0 = arith.constant 0 : i32
    return %arg0, %c0_i32 : i32, i32
  }
  func.func @transform_1(%arg0: i32) -> (i32, i32) {
    %c0_i32 = arith.constant 0 : i32
    %c0_i32_0 = arith.constant 0 : i32
    return %arg0, %c0_i32 : i32, i32
  }
  func.func @transform_2(%arg0: i32) -> (i32, i32) {
    %c0_i32 = arith.constant 0 : i32
    %c0_i32_0 = arith.constant 0 : i32
    return %arg0, %c0_i32 : i32, i32
  }
}

</mosaic_0001>

<bundles_post_ra>
// kernel: tpu_custom_call.1
= control target key start
LH: loop header
LB: loop body
LE: loop exit
PB: predicated region body
PF: predicated region fallthrough
CT: control target
= control target key end

     0   :  { %7 = vsyncpa [#allocation3], 0  ;;  %s231_s0 = inlined_call_operand.hbm [shape: f32[12,512], index: 0, kind: input, shape index: {}]   ;;  %s232_s1 = inlined_call_operand.hbm [shape: f32[12,512], index: 1, kind: input, shape index: {}]   ;;  %s233_s2 = inlined_call_operand.hbm [shape: f32[12,512], index: 2, kind: output, shape index: {}]  }
   0x1   :  { %8 = vsyncpa [#allocation6], 0 }
   0x2   :  { %9 = vsyncpa [#allocation4], 0  ;;  %s193_s9 = smov [#allocation2]  }
   0x3   :  { %s15_s10 = sshll.u32 %s193_s9, 4  ;;  %s16_s10 = int_to_ptr.vmem [resolvable:$true] %s15_s10 }
   0x4   :  { %s135_s11 = scalar_lea.vmem %s16_s10, 1024  ;;  %p140_p1 = scmp.lt.s32.totalorder %s16_s10, %s16_s10 }
   0x5   :  { %p136_p0 = scmp.ne.s32.totalorder %s16_s10, %s135_s11  ;;  %p141_p2 = scmp.lt.s32.totalorder %s135_s11, %s135_s11 }
   0x7   :  { %p142_p3 = por %p141_p2, %p140_p1 }
   0x9   :  { %p143_p4 = pnand %p142_p3, %p136_p0 }
   0xb   :  { %146 = shalt.err (!%p143_p4)
}
   0xc   :  { %s194_s12 = smov 512   ;;  %s195_s13 = smov 32  }
   0xd   :  { %21 = dma.hbm_to_vmem [thread:$0]  %s231_s0, 1024, %s16_s10, [#allocation3], %s194_s12, %s194_s12, %s195_s13  }
   0xe   :  { %s196_s16 = smov [#allocation5]  }
   0xf   :  { %s27_s17 = sshll.u32 %s196_s16, 4  ;;  %s28_s17 = int_to_ptr.vmem [resolvable:$true] %s27_s17 }
  0x10   :  { %s155_s18 = scalar_lea.vmem %s28_s17, 1024  ;;  %p160_p6 = scmp.lt.s32.totalorder %s28_s17, %s28_s17 }
  0x11   :  { %p156_p5 = scmp.ne.s32.totalorder %s28_s17, %s155_s18  ;;  %p161_p7 = scmp.lt.s32.totalorder %s155_s18, %s155_s18 }
  0x13   :  { %p162_p8 = por %p161_p7, %p160_p6 }
  0x15   :  { %p163_p9 = pnand %p162_p8, %p156_p5 }
  0x17   :  { %166 = shalt.err (!%p163_p9)
}
  0x18   :  { %33 = dma.hbm_to_vmem [thread:$0]  %s232_s1, 1024, %s28_s17, [#allocation6], %s194_s12, %s194_s12, %s195_s13  }
  0x19   :  { %187 = dma.done.wait [#allocation3], 1024  }
  0x1a   :  { %188 = vsyncadd [#allocation3], 4294966272 }
  0x1b   :  { %189 = dma.done.wait [#allocation6], 1024  }
  0x1c   :  { %190 = vsyncadd [#allocation6], 4294966272  ;;  %v40_v0 = vld [vmem:[#allocation5] sm:$0xff]  ;;  %v41_v1 = vld [vmem:[#allocation5 + $0x8] sm:$0xff]  ;;  %s197_s0 = smov [#allocation7]  }
  0x1d   :  { %v48_v2 = vmul.f32 2.0, %v40_v0  ;;  %v72_v3 = vld [vmem:[#allocation2] sm:$0xff]  ;;  %v49_v4 = vmul.f32 2.0, %v41_v1  ;;  %v42_v5 = vld [vmem:[#allocation5 + $0x10] sm:$0xff]  ;;  %v73_v6 = vld [vmem:[#allocation2 + $0x8] sm:$0xff]  ;;  %s101_s1 = sshll.u32 %s197_s0, 4  ;;  %s102_s1 = int_to_ptr.vmem [resolvable:$true] %s101_s1 }
  0x1e   :  { %v50_v7 = vmul.f32 2.0, %v42_v5  ;;  %v43_v8 = vld [vmem:[#allocation5 + $0x18] sm:$0xff]  ;;  %v44_v9 = vld [vmem:[#allocation5 + $0x20] sm:$0xf]  ;;  %v74_v12 = vld [vmem:[#allocation2 + $0x10] sm:$0xff]  ;;  %s167_s21 = scalar_lea.vmem %s102_s1, 1024  ;;  %p172_p11 = scmp.lt.s32.totalorder %s102_s1, %s102_s1 }
  0x1f   :  { %v114_v10 = vclamps-f32 %v48_v2, 2.0  ;;  %v115_v11 = vclamps-f32 %v49_v4, 2.0  ;;  %v51_v13 = vmul.f32 2.0, %v43_v8  ;;  %v52_v14 = vmul.f32 2.0, %v44_v9  ;;  %v75_v16 = vld [vmem:[#allocation2 + $0x18] sm:$0xff]  ;;  %p168_p10 = scmp.ne.s32.totalorder %s102_s1, %s167_s21  ;;  %p173_p12 = scmp.lt.s32.totalorder %s167_s21, %s167_s21 }
  0x20   :  { %v116_v15 = vclamps-f32 %v50_v7, 2.0  ;;  %v76_v17 = vld [vmem:[#allocation2 + $0x20] sm:$0xf]  ;;  %v45_v18 = vld [vmem:[#allocation5 + $0x28] sm:$0xf] }
  0x21   :  { %v80_v19 = vadd.f32 %v114_v10, %v72_v3  ;;  %v81_v20 = vadd.f32 %v115_v11, %v73_v6  ;;  %v117_v21 = vclamps-f32 %v51_v13, 2.0  ;;  %v118_v22 = vclamps-f32 %v52_v14, 2.0  ;;  %v46_v23 = vld [vmem:[#allocation5 + $0x30] sm:$0xf]  ;;  %v47_v27 = vld [vmem:[#allocation5 + $0x38] sm:$0xf]  ;;  %p174_p13 = por %p173_p12, %p172_p11 }
  0x22   :  { %v82_v24 = vadd.f32 %v116_v15, %v74_v12  ;;  %v53_v25 = vmul.f32 2.0, %v45_v18  ;;  %v54_v26 = vmul.f32 2.0, %v46_v23  ;;  %v77_v30 = vld [vmem:[#allocation2 + $0x28] sm:$0xf]  ;;  %v78_v31 = vld [vmem:[#allocation2 + $0x30] sm:$0xf] }
  0x23   :  { %88 = vst [vmem:[#allocation7] sm:$0xff] %v80_v19  ;;  %89 = vst [vmem:[#allocation7 + $0x8] sm:$0xff] %v81_v20  ;;  %v83_v28 = vadd.f32 %v117_v21, %v75_v16  ;;  %v84_v29 = vadd.f32 %v118_v22, %v76_v17  ;;  %v55_v32 = vmul.f32 2.0, %v47_v27  ;;  %v79_v35 = vld [vmem:[#allocation2 + $0x38] sm:$0xf]  ;;  %p175_p0 = pnand %p174_p13, %p168_p10 }
  0x24   :  { %90 = vst [vmem:[#allocation7 + $0x10] sm:$0xff] %v82_v24  ;;  %v119_v33 = vclamps-f32 %v53_v25, 2.0  ;;  %v120_v34 = vclamps-f32 %v54_v26, 2.0 }
  0x25   :  { %91 = vst [vmem:[#allocation7 + $0x18] sm:$0xff] %v83_v28  ;;  %92 = vst [vmem:[#allocation7 + $0x20] sm:$0xf] %v84_v29  ;;  %v121_v36 = vclamps-f32 %v55_v32, 2.0 }
  0x26   :  { %v85_v37 = vadd.f32 %v119_v33, %v77_v30  ;;  %v86_v38 = vadd.f32 %v120_v34, %v78_v31 }
  0x27   :  { %v87_v39 = vadd.f32 %v121_v36, %v79_v35 }
  0x28   :  { %93 = vst [vmem:[#allocation7 + $0x28] sm:$0xf] %v85_v37  ;;  %94 = vst [vmem:[#allocation7 + $0x30] sm:$0xf] %v86_v38 }
  0x29   :  { %95 = vst [vmem:[#allocation7 + $0x38] sm:$0xf] %v87_v39 }
  0x2a   :  { %178 = shalt.err (!%p175_p0)
}
  0x2b   :  { %107 = dma.vmem_to_hbm [thread:$0]  %s102_s1, 1024, %s233_s2, [#allocation4], %s194_s12, %s194_s12, %s195_s13  }
  0x2c   :  { %191 = dma.done.wait [#allocation4], 1024  }
  0x2d   :  { %192 = vsyncadd [#allocation4], 4294966272 }
  0x2e   :  { %111 = vsyncpa [#allocation3], 1 }
  0x2f   :  { %112 = vsyncpa [#allocation6], 1 }
  0x30   :  { %113 = vsyncpa [#allocation4], 1 }

</bundles_post_ra>
